<compile_context>
chip_gen: v7x
topology: tpu7x:2x2x1
jax: 0.10.0
libtpu: 0.0.40
codegen_flags: <defaults>
</compile_context>

<pallas_src>
import jax
import jax.numpy as jnp
from jax import lax
from jax.experimental import pallas as pl
from jax.experimental.pallas import tpu as pltpu


def _round_up(x, m):
    return (x + m - 1) // m * m


def _shift_next(x, axis):
    """result[..., i, ...] = x[..., i + 1, ...]; wrap-around entries masked by caller."""
    n = x.shape[axis]
    if n == 1:
        return x
    # np.roll semantics: roll by (n-1) == shift left/up by 1.
    return pltpu.roll(x, shift=n - 1, axis=axis)


def _vmem_limit_bytes():
    """Generation-aware scoped-VMEM budget (v7x: 64 MiB/TC, v5e/v6e: 128 MiB)."""
    try:
        phys = int(pltpu.get_tpu_info().vmem_capacity_bytes)
    except Exception:
        phys = 64 * 1024 * 1024                # conservative default
    if phys <= 80 * 1024 * 1024:               # v7x-class TensorCore
        return 40 * 1024 * 1024
    return 96 * 1024 * 1024                    # v5e / v6e


def ltv_loss(origin, illumination, weight, *, alpha=1.2, beta=1.5, eps=1e-4,
             tile_h=None, approx_reciprocal=True, _valid_w=None):
    """Pallas implementation of LTVloss.forward (returns a scalar)."""
    origin = origin.astype(jnp.float32)
    illumination = illumination.astype(jnp.float32)
    B, C, H, W_arr = origin.shape
    assert C == 3, "origin must be [B, 3, H, W]"
    assert illumination.shape == (B, 1, H, W_arr), "illumination must be [B, 1, H, W]"
    W = int(W_arr if _valid_w is None else _valid_w)      # logically valid width

    # ---- tiling --------------------------------------------------------------
    W_blk = _round_up(W_arr, 128)              # lane-dense block width (VMEM-side pad)
    vmem_limit = _vmem_limit_bytes()
    # Per-row VMEM cost: double-buffered (3+1)-channel f32 inputs (32*W_blk bytes)
    # plus an allowance for ~10 live full-width f32 temporaries in the body.
    per_row_bytes = 72 * W_blk
    auto_rows = max(8, int(0.85 * vmem_limit) // per_row_bytes)
    rows = auto_rows if tile_h is None else int(tile_h)
    TILE_H = max(8, min(rows // 8 * 8, 1024))
    if H >= 8:
        h_cap = H if H % 8 == 0 else (H // 8) * 8   # keep the row block inside H
        TILE_H = min(TILE_H, h_cap)
    else:
        TILE_H = H                                   # tiny image: one full-H block
    T = (H + TILE_H - 1) // TILE_H
    OUT_R = 8 if TILE_H % 8 == 0 else 1

    # ---- kernel --------------------------------------------------------------
    def kernel(o_ref, il_ref, out_ref, carry_l_ref, carry_i_ref):
        t = pl.program_id(1)

        # log-luma + illumination of this (TILE_H, W_blk) row tile
        lum = (o_ref[0, 0, :, :] * 0.299 + o_ref[0, 1, :, :] * 0.587
               + o_ref[0, 2, :, :] * 0.114)
        L = jnp.log(lum + eps)
        ill = il_ref[0, 0, :, :]

        # neighbours via XLU rolls; wrap-around entries are masked below and the
        # row-tile boundary is handled by the carried row from the previous step.
        L_right = _shift_next(L, axis=1)
        ill_right = _shift_next(ill, axis=1)
        L_down = _shift_next(L, axis=0)
        ill_down = _shift_next(ill, axis=0)

        def tv_weight(d):
            # beta / (|d|^alpha + eps); |d|^alpha as exp(alpha*log|d|): |d|=0 -> 0
            p = jnp.exp(alpha * jnp.log(jnp.abs(d)))
            return beta * pl.reciprocal(p + eps, approx=approx_reciprocal)

        dx = L - L_right
        dy = L - L_down
        ix = ill - ill_right
        iy = ill - ill_down
        x_term = tv_weight(dx) * (ix * ix)
        y_term = tv_weight(dy) * (iy * iy)

        # narrow masks, broadcast inside the selects (no full-tile iotas)
        row = lax.broadcasted_iota(jnp.int32, (TILE_H, 1), 0)
        g_row = t * TILE_H + row
        x_row_ok = g_row < (H - 1)                        # rows 0..H-2
        y_row_ok = x_row_ok & (row < (TILE_H - 1))        # in-tile dy only
        col = lax.broadcasted_iota(jnp.int32, (1, W_blk), 1)
        col_ok = col < (W - 1)                            # cols 0..W-2

        loss = jnp.where(x_row_ok, x_term, 0.0) + jnp.where(y_row_ok, y_term, 0.0)
        loss = jnp.where(col_ok, loss, 0.0)

        # dy across the row-tile boundary: previous tile's last row (carried in
        # VMEM scratch) against this tile's first row.  Dropped at t == 0.
        dyb = carry_l_ref[...] - L[0:1, :]
        iyb = carry_i_ref[...] - ill[0:1, :]
        yb = tv_weight(dyb) * (iyb * iyb)
        yb = jnp.where(col_ok & (t > 0), yb, 0.0)         # (1, W_blk)

        # update carries for the next row tile (read-before-write above)
        carry_l_ref[...] = L[TILE_H - 1:TILE_H, :]
        carry_i_ref[...] = ill[TILE_H - 1:TILE_H, :]

        # fold sublanes (8-row groups), then lanes, into a (OUT_R, 128) partial
        if OUT_R == 8:
            part = loss[0:8, :]
            for rb in range(1, TILE_H // 8):
                part = part + loss[rb * 8:(rb + 1) * 8, :]
            row8 = lax.broadcasted_iota(jnp.int32, (8, 1), 0)
            part = part + jnp.where(row8 == 0, yb, 0.0)
        else:
            part = jnp.sum(loss, axis=0, keepdims=True) + yb
        acc = part[:, 0:128]
        for cb in range(1, W_blk // 128):
            acc = acc + part[:, cb * 128:(cb + 1) * 128]
        out_ref[0, 0, :, :] = acc

    grid_spec = pltpu.PrefetchScalarGridSpec(
        num_scalar_prefetch=0,
        grid=(B, T),
        in_specs=[
            pl.BlockSpec((1, 3, TILE_H, W_blk), lambda b, t: (b, 0, t, 0)),
            pl.BlockSpec((1, 1, TILE_H, W_blk), lambda b, t: (b, 0, t, 0)),
        ],
        out_specs=pl.BlockSpec((1, 1, OUT_R, 128), lambda b, t: (b, t, 0, 0)),
        scratch_shapes=[
            pltpu.VMEM((1, W_blk), jnp.float32),   # carried log-luma row
            pltpu.VMEM((1, W_blk), jnp.float32),   # carried illumination row
        ],
    )

    call = pl.pallas_call(
        kernel,
        out_shape=jax.ShapeDtypeStruct((B, T, OUT_R, 128), jnp.float32),
        grid_spec=grid_spec,
        compiler_params=pltpu.CompilerParams(
            dimension_semantics=("parallel", "arbitrary"),
            vmem_limit_bytes=vmem_limit,
        ),
    )

    try:
        partial = call(origin, illumination)
    except Exception:
        if W_arr % 128 == 0:
            raise
        # Fallback: if this Pallas build rejects a lane block wider than the
        # array, pad W once in HBM (one extra pass) and retry lane-aligned.
        wp = _round_up(W_arr, 128)
        pad = ((0, 0), (0, 0), (0, 0), (0, wp - W_arr))
        return ltv_loss(jnp.pad(origin, pad), jnp.pad(illumination, pad), weight,
                        alpha=alpha, beta=beta, eps=eps, tile_h=tile_h,
                        approx_reciprocal=approx_reciprocal, _valid_w=W)

    n_terms = B * (H - 1) * (W - 1)
    tvloss = jnp.sum(partial) / n_terms / 2.0
    return tvloss * weight


def _ltv_loss_ref(origin, illumination, weight, *, alpha=1.2, beta=1.5, eps=1e-4):
    """Pure-JAX reference mirroring the PyTorch module (for validation)."""
    I = (origin[:, 0:1] * 0.299 + origin[:, 1:2] * 0.587 + origin[:, 2:3] * 0.114)
    L = jnp.log(I + eps)
    dx = L[:, :, :-1, :-1] - L[:, :, :-1, 1:]
    dy = L[:, :, :-1, :-1] - L[:, :, 1:, :-1]
    dx = beta / (jnp.power(jnp.abs(dx), alpha) + eps)
    dy = beta / (jnp.power(jnp.abs(dy), alpha) + eps)
    x_loss = dx * (illumination[:, :, :-1, :-1] - illumination[:, :, :-1, 1:]) ** 2
    y_loss = dy * (illumination[:, :, :-1, :-1] - illumination[:, :, 1:, :-1]) ** 2
    return jnp.mean(x_loss + y_loss) / 2.0 * weight


if __name__ == "__main__":
    key = jax.random.PRNGKey(0)

    def make_inputs(k, B, H, W):
        k1, k2 = jax.random.split(k)
        origin = jax.random.uniform(k1, (B, 3, H, W), dtype=jnp.float32)
        illum = jax.random.uniform(k2, (B, 1, H, W), dtype=jnp.float32)
        return origin, illum

    configs = [
        # (B, H, W, tile_h, approx_reciprocal, rtol)
        (2, 16, 16, 16,   False, 1e-4),   # single row tile per batch
        (2, 16, 16, 8,    False, 1e-4),   # multiple row tiles -> carried-row path
        (2, 24, 200, 8,   False, 1e-4),   # W not lane-aligned (padded in VMEM only)
        (2, 20, 256, 8,   False, 1e-4),   # H not a multiple of the row tile
        (2, 32, 128, None, True, 2e-2),   # auto tile + fast EUP approx reciprocal
    ]
    for i, (B, H, W, th, approx, rtol) in enumerate(configs):
        key, sub = jax.random.split(key)
        origin, illum = make_inputs(sub, B, H, W)
        weight = 1.0 + 0.5 * i
        out = ltv_loss(origin, illum, weight, tile_h=th, approx_reciprocal=approx)
        out = jax.block_until_ready(out)
        ref = _ltv_loss_ref(origin, illum, weight)
        assert jnp.allclose(out, ref, rtol=rtol, atol=1e-6), (i, float(out), float(ref))

    print("KERNEL_OK")
</pallas_src>

<mosaic_0001>
module attributes {stable_mosaic.version = 11 : i64} {
  func.func @kernel(%arg0: i32, %arg1: i32, %arg2: memref<1x3x16x128xf32, #tpu.memory_space<vmem>>, %arg3: memref<1x1x16x128xf32, #tpu.memory_space<vmem>>, %arg4: memref<1x1x8x128xf32, #tpu.memory_space<vmem>>, %arg5: memref<1x128xf32, #tpu.memory_space<vmem>>, %arg6: memref<1x128xf32, #tpu.memory_space<vmem>>) attributes {dimension_semantics = [#tpu.dimension_semantics<parallel>, #tpu.dimension_semantics<arbitrary>], iteration_bounds = array<i64: 2, 1>, scalar_prefetch = 0 : i64, scratch_operands = 2 : i64, tpu.core_type = #tpu.core_type<tc>, window_params = [{transform_indices = @transform_0, window_bounds = array<i64: 1, 3, 16, 128>}, {transform_indices = @transform_1, window_bounds = array<i64: 1, 1, 16, 128>}, {transform_indices = @transform_2, window_bounds = array<i64: 1, 1, 8, 128>}]} {
    %c0 = arith.constant 0 : index
    %c0_0 = arith.constant 0 : index
    %c0_1 = arith.constant 0 : index
    %c0_2 = arith.constant 0 : index
    %0 = vector.load %arg2[%c0, %c0_0, %c0_1, %c0_2] : memref<1x3x16x128xf32, #tpu.memory_space<vmem>>, vector<1x1x16x128xf32>
    %1 = vector.shape_cast %0 : vector<1x1x16x128xf32> to vector<16x128xf32>
    %cst = arith.constant 2.990000e-01 : f32
    %2 = vector.broadcast %cst : f32 to vector<16x128xf32>
    %3 = arith.mulf %1, %2 : vector<16x128xf32>
    %c0_3 = arith.constant 0 : index
    %c1 = arith.constant 1 : index
    %c0_4 = arith.constant 0 : index
    %c0_5 = arith.constant 0 : index
    %4 = vector.load %arg2[%c0_3, %c1, %c0_4, %c0_5] : memref<1x3x16x128xf32, #tpu.memory_space<vmem>>, vector<1x1x16x128xf32>
    %5 = vector.shape_cast %4 : vector<1x1x16x128xf32> to vector<16x128xf32>
    %cst_6 = arith.constant 5.870000e-01 : f32
    %6 = vector.broadcast %cst_6 : f32 to vector<16x128xf32>
    %7 = arith.mulf %5, %6 : vector<16x128xf32>
    %8 = arith.addf %3, %7 : vector<16x128xf32>
    %c0_7 = arith.constant 0 : index
    %c2 = arith.constant 2 : index
    %c0_8 = arith.constant 0 : index
    %c0_9 = arith.constant 0 : index
    %9 = vector.load %arg2[%c0_7, %c2, %c0_8, %c0_9] : memref<1x3x16x128xf32, #tpu.memory_space<vmem>>, vector<1x1x16x128xf32>
    %10 = vector.shape_cast %9 : vector<1x1x16x128xf32> to vector<16x128xf32>
    %cst_10 = arith.constant 1.140000e-01 : f32
    %11 = vector.broadcast %cst_10 : f32 to vector<16x128xf32>
    %12 = arith.mulf %10, %11 : vector<16x128xf32>
    %13 = arith.addf %8, %12 : vector<16x128xf32>
    %cst_11 = arith.constant 9.99999974E-5 : f32
    %14 = vector.broadcast %cst_11 : f32 to vector<16x128xf32>
    %15 = arith.addf %13, %14 : vector<16x128xf32>
    %16 = math.log %15 : vector<16x128xf32>
    %c0_12 = arith.constant 0 : index
    %c0_13 = arith.constant 0 : index
    %c0_14 = arith.constant 0 : index
    %c0_15 = arith.constant 0 : index
    %17 = vector.load %arg3[%c0_12, %c0_13, %c0_14, %c0_15] : memref<1x1x16x128xf32, #tpu.memory_space<vmem>>, vector<1x1x16x128xf32>
    %18 = vector.shape_cast %17 : vector<1x1x16x128xf32> to vector<16x128xf32>
    %c127_i32 = arith.constant 127 : i32
    %19 = tpu.dynamic_rotate %16 by %c127_i32 dim 1 : vector<16x128xf32>, i32 -> vector<16x128xf32>
    %c127_i32_16 = arith.constant 127 : i32
    %20 = tpu.dynamic_rotate %18 by %c127_i32_16 dim 1 : vector<16x128xf32>, i32 -> vector<16x128xf32>
    %c15_i32 = arith.constant 15 : i32
    %21 = tpu.dynamic_rotate %16 by %c15_i32 dim 0 : vector<16x128xf32>, i32 -> vector<16x128xf32>
    %c15_i32_17 = arith.constant 15 : i32
    %22 = tpu.dynamic_rotate %18 by %c15_i32_17 dim 0 : vector<16x128xf32>, i32 -> vector<16x128xf32>
    %23 = arith.subf %16, %19 : vector<16x128xf32>
    %24 = arith.subf %16, %21 : vector<16x128xf32>
    %25 = arith.subf %18, %20 : vector<16x128xf32>
    %26 = arith.subf %18, %22 : vector<16x128xf32>
    %27 = math.absf %23 : vector<16x128xf32>
    %28 = math.log %27 : vector<16x128xf32>
    %cst_18 = arith.constant 1.200000e+00 : f32
    %29 = vector.broadcast %cst_18 : f32 to vector<16x128xf32>
    %30 = arith.mulf %29, %28 : vector<16x128xf32>
    %31 = math.exp %30 : vector<16x128xf32>
    %cst_19 = arith.constant 9.99999974E-5 : f32
    %32 = vector.broadcast %cst_19 : f32 to vector<16x128xf32>
    %33 = arith.addf %31, %32 : vector<16x128xf32>
    %34 = tpu.reciprocal %33 : vector<16x128xf32> -> vector<16x128xf32>
    %cst_20 = arith.constant 1.500000e+00 : f32
    %35 = vector.broadcast %cst_20 : f32 to vector<16x128xf32>
    %36 = arith.mulf %35, %34 : vector<16x128xf32>
    %37 = arith.mulf %25, %25 : vector<16x128xf32>
    %38 = arith.mulf %36, %37 : vector<16x128xf32>
    %39 = math.absf %24 : vector<16x128xf32>
    %40 = math.log %39 : vector<16x128xf32>
    %cst_21 = arith.constant 1.200000e+00 : f32
    %41 = vector.broadcast %cst_21 : f32 to vector<16x128xf32>
    %42 = arith.mulf %41, %40 : vector<16x128xf32>
    %43 = math.exp %42 : vector<16x128xf32>
    %cst_22 = arith.constant 9.99999974E-5 : f32
    %44 = vector.broadcast %cst_22 : f32 to vector<16x128xf32>
    %45 = arith.addf %43, %44 : vector<16x128xf32>
    %46 = tpu.reciprocal %45 : vector<16x128xf32> -> vector<16x128xf32>
    %cst_23 = arith.constant 1.500000e+00 : f32
    %47 = vector.broadcast %cst_23 : f32 to vector<16x128xf32>
    %48 = arith.mulf %47, %46 : vector<16x128xf32>
    %49 = arith.mulf %26, %26 : vector<16x128xf32>
    %50 = arith.mulf %48, %49 : vector<16x128xf32>
    %51 = tpu.iota {dimensions = array<i32: 0>} : vector<16x1xi32>
    %c16_i32 = arith.constant 16 : i32
    %52 = arith.muli %arg1, %c16_i32 : i32
    %53 = vector.broadcast %52 : i32 to vector<16x1xi32>
    %54 = arith.addi %53, %51 : vector<16x1xi32>
    %c15_i32_24 = arith.constant 15 : i32
    %55 = vector.broadcast %c15_i32_24 : i32 to vector<16x1xi32>
    %56 = arith.cmpi slt, %54, %55 : vector<16x1xi32>
    %c15_i32_25 = arith.constant 15 : i32
    %57 = vector.broadcast %c15_i32_25 : i32 to vector<16x1xi32>
    %58 = arith.cmpi slt, %51, %57 : vector<16x1xi32>
    %59 = arith.andi %56, %58 : vector<16x1xi1>
    %60 = tpu.iota {dimensions = array<i32: 1>} : vector<1x128xi32>
    %c15_i32_26 = arith.constant 15 : i32
    %61 = vector.broadcast %c15_i32_26 : i32 to vector<1x128xi32>
    %62 = arith.cmpi slt, %60, %61 : vector<1x128xi32>
    %cst_27 = arith.constant 0.000000e+00 : f32
    %63 = vector.shape_cast %56 : vector<16x1xi1> to vector<16x1xi1>
    %64 = vector.broadcast %63 : vector<16x1xi1> to vector<16x128xi1>
    %65 = vector.broadcast %cst_27 : f32 to vector<16x128xf32>
    %66 = arith.select %64, %38, %65 : vector<16x128xi1>, vector<16x128xf32>
    %cst_28 = arith.constant 0.000000e+00 : f32
    %67 = vector.shape_cast %59 : vector<16x1xi1> to vector<16x1xi1>
    %68 = vector.broadcast %67 : vector<16x1xi1> to vector<16x128xi1>
    %69 = vector.broadcast %cst_28 : f32 to vector<16x128xf32>
    %70 = arith.select %68, %50, %69 : vector<16x128xi1>, vector<16x128xf32>
    %71 = arith.addf %66, %70 : vector<16x128xf32>
    %cst_29 = arith.constant 0.000000e+00 : f32
    %72 = vector.shape_cast %62 : vector<1x128xi1> to vector<1x128xi1>
    %73 = vector.broadcast %72 : vector<1x128xi1> to vector<16x128xi1>
    %74 = vector.broadcast %cst_29 : f32 to vector<16x128xf32>
    %75 = arith.select %73, %71, %74 : vector<16x128xi1>, vector<16x128xf32>
    %c0_30 = arith.constant 0 : index
    %c0_31 = arith.constant 0 : index
    %76 = vector.load %arg5[%c0_30, %c0_31] : memref<1x128xf32, #tpu.memory_space<vmem>>, vector<1x128xf32>
    %77 = vector.extract_strided_slice %16 {offsets = [0, 0], sizes = [1, 128], strides = [1, 1]} : vector<16x128xf32> to vector<1x128xf32>
    %78 = arith.subf %76, %77 : vector<1x128xf32>
    %c0_32 = arith.constant 0 : index
    %c0_33 = arith.constant 0 : index
    %79 = vector.load %arg6[%c0_32, %c0_33] : memref<1x128xf32, #tpu.memory_space<vmem>>, vector<1x128xf32>
    %80 = vector.extract_strided_slice %18 {offsets = [0, 0], sizes = [1, 128], strides = [1, 1]} : vector<16x128xf32> to vector<1x128xf32>
    %81 = arith.subf %79, %80 : vector<1x128xf32>
    %82 = math.absf %78 : vector<1x128xf32>
    %83 = math.log %82 : vector<1x128xf32>
    %cst_34 = arith.constant 1.200000e+00 : f32
    %84 = vector.broadcast %cst_34 : f32 to vector<1x128xf32>
    %85 = arith.mulf %84, %83 : vector<1x128xf32>
    %86 = math.exp %85 : vector<1x128xf32>
    %cst_35 = arith.constant 9.99999974E-5 : f32
    %87 = vector.broadcast %cst_35 : f32 to vector<1x128xf32>
    %88 = arith.addf %86, %87 : vector<1x128xf32>
    %89 = tpu.reciprocal %88 : vector<1x128xf32> -> vector<1x128xf32>
    %cst_36 = arith.constant 1.500000e+00 : f32
    %90 = vector.broadcast %cst_36 : f32 to vector<1x128xf32>
    %91 = arith.mulf %90, %89 : vector<1x128xf32>
    %92 = arith.mulf %81, %81 : vector<1x128xf32>
    %93 = arith.mulf %91, %92 : vector<1x128xf32>
    %c0_i32 = arith.constant 0 : i32
    %94 = arith.cmpi sgt, %arg1, %c0_i32 : i32
    %95 = vector.broadcast %94 : i1 to vector<1x128xi1>
    %96 = arith.andi %62, %95 : vector<1x128xi1>
    %cst_37 = arith.constant 0.000000e+00 : f32
    %97 = vector.broadcast %cst_37 : f32 to vector<1x128xf32>
    %98 = arith.select %96, %93, %97 : vector<1x128xi1>, vector<1x128xf32>
    %99 = vector.extract_strided_slice %16 {offsets = [15, 0], sizes = [1, 128], strides = [1, 1]} : vector<16x128xf32> to vector<1x128xf32>
    %c0_38 = arith.constant 0 : index
    %c0_39 = arith.constant 0 : index
    %100 = vector.load %arg5[%c0_38, %c0_39] : memref<1x128xf32, #tpu.memory_space<vmem>>, vector<1x128xf32>
    tpu.vector_store %arg5[%c0_38, %c0_39], %99 {strides = array<i32>} : memref<1x128xf32, #tpu.memory_space<vmem>>, vector<1x128xf32>,
    %101 = vector.extract_strided_slice %18 {offsets = [15, 0], sizes = [1, 128], strides = [1, 1]} : vector<16x128xf32> to vector<1x128xf32>
    %c0_40 = arith.constant 0 : index
    %c0_41 = arith.constant 0 : index
    %102 = vector.load %arg6[%c0_40, %c0_41] : memref<1x128xf32, #tpu.memory_space<vmem>>, vector<1x128xf32>
    tpu.vector_store %arg6[%c0_40, %c0_41], %101 {strides = array<i32>} : memref<1x128xf32, #tpu.memory_space<vmem>>, vector<1x128xf32>,
    %103 = vector.extract_strided_slice %75 {offsets = [0, 0], sizes = [8, 128], strides = [1, 1]} : vector<16x128xf32> to vector<8x128xf32>
    %104 = vector.extract_strided_slice %75 {offsets = [8, 0], sizes = [8, 128], strides = [1, 1]} : vector<16x128xf32> to vector<8x128xf32>
    %105 = arith.addf %103, %104 : vector<8x128xf32>
    %106 = tpu.iota {dimensions = array<i32: 0>} : vector<8x1xi32>
    %c0_i32_42 = arith.constant 0 : i32
    %107 = vector.broadcast %c0_i32_42 : i32 to vector<8x1xi32>
    %108 = arith.cmpi eq, %106, %107 : vector<8x1xi32>
    %cst_43 = arith.constant 0.000000e+00 : f32
    %109 = vector.shape_cast %108 : vector<8x1xi1> to vector<8x1xi1>
    %110 = vector.broadcast %109 : vector<8x1xi1> to vector<8x128xi1>
    %111 = vector.shape_cast %98 : vector<1x128xf32> to vector<1x128xf32>
    %112 = vector.broadcast %111 : vector<1x128xf32> to vector<8x128xf32>
    %113 = vector.broadcast %cst_43 : f32 to vector<8x128xf32>
    %114 = arith.select %110, %112, %113 : vector<8x128xi1>, vector<8x128xf32>
    %115 = arith.addf %105, %114 : vector<8x128xf32>
    %c0_44 = arith.constant 0 : index
    %c0_45 = arith.constant 0 : index
    %c0_46 = arith.constant 0 : index
    %c0_47 = arith.constant 0 : index
    %116 = vector.load %arg4[%c0_44, %c0_45, %c0_46, %c0_47] : memref<1x1x8x128xf32, #tpu.memory_space<vmem>>, vector<1x1x8x128xf32>
    %117 = vector.shape_cast %116 : vector<1x1x8x128xf32> to vector<8x128xf32>
    %118 = vector.shape_cast %115 : vector<8x128xf32> to vector<1x1x8x128xf32>
    tpu.vector_store %arg4[%c0_44, %c0_45, %c0_46, %c0_47], %118 {strides = array<i32>} : memref<1x1x8x128xf32, #tpu.memory_space<vmem>>, vector<1x1x8x128xf32>,
    return
  }
  func.func @transform_0(%arg0: i32, %arg1: i32) -> (i32, i32, i32, i32) {
    %c0_i32 = arith.constant 0 : i32
    %c0_i32_0 = arith.constant 0 : i32
    %c0_i32_1 = arith.constant 0 : i32
    return %arg0, %c0_i32, %arg1, %c0_i32_0 : i32, i32, i32, i32
  }
  func.func @transform_1(%arg0: i32, %arg1: i32) -> (i32, i32, i32, i32) {
    %c0_i32 = arith.constant 0 : i32
    %c0_i32_0 = arith.constant 0 : i32
    %c0_i32_1 = arith.constant 0 : i32
    return %arg0, %c0_i32, %arg1, %c0_i32_0 : i32, i32, i32, i32
  }
  func.func @transform_2(%arg0: i32, %arg1: i32) -> (i32, i32, i32, i32) {
    %c0_i32 = arith.constant 0 : i32
    %c0_i32_0 = arith.constant 0 : i32
    %c0_i32_1 = arith.constant 0 : i32
    return %arg0, %arg1, %c0_i32, %c0_i32_0 : i32, i32, i32, i32
  }
}

module attributes {stable_mosaic.version = 11 : i64} {
  func.func @kernel(%arg0: i32, %arg1: i32, %arg2: memref<1x3x16x128xf32, #tpu.memory_space<vmem>>, %arg3: memref<1x1x16x128xf32, #tpu.memory_space<vmem>>, %arg4: memref<1x1x8x128xf32, #tpu.memory_space<vmem>>, %arg5: memref<1x128xf32, #tpu.memory_space<vmem>>, %arg6: memref<1x128xf32, #tpu.memory_space<vmem>>) attributes {dimension_semantics = [#tpu.dimension_semantics<parallel>, #tpu.dimension_semantics<arbitrary>], iteration_bounds = array<i64: 2, 1>, scalar_prefetch = 0 : i64, scratch_operands = 2 : i64, tpu.core_type = #tpu.core_type<tc>, window_params = [{transform_indices = @transform_0, window_bounds = array<i64: 1, 3, 16, 128>}, {transform_indices = @transform_1, window_bounds = array<i64: 1, 1, 16, 128>}, {transform_indices = @transform_2, window_bounds = array<i64: 1, 1, 8, 128>}]} {
    %c0 = arith.constant 0 : index
    %c0_0 = arith.constant 0 : index
    %c0_1 = arith.constant 0 : index
    %c0_2 = arith.constant 0 : index
    %0 = vector.load %arg2[%c0, %c0_0, %c0_1, %c0_2] : memref<1x3x16x128xf32, #tpu.memory_space<vmem>>, vector<1x1x16x128xf32>
    %1 = vector.shape_cast %0 : vector<1x1x16x128xf32> to vector<16x128xf32>
    %cst = arith.constant 2.990000e-01 : f32
    %2 = vector.broadcast %cst : f32 to vector<16x128xf32>
    %3 = arith.mulf %1, %2 : vector<16x128xf32>
    %c0_3 = arith.constant 0 : index
    %c1 = arith.constant 1 : index
    %c0_4 = arith.constant 0 : index
    %c0_5 = arith.constant 0 : index
    %4 = vector.load %arg2[%c0_3, %c1, %c0_4, %c0_5] : memref<1x3x16x128xf32, #tpu.memory_space<vmem>>, vector<1x1x16x128xf32>
    %5 = vector.shape_cast %4 : vector<1x1x16x128xf32> to vector<16x128xf32>
    %cst_6 = arith.constant 5.870000e-01 : f32
    %6 = vector.broadcast %cst_6 : f32 to vector<16x128xf32>
    %7 = arith.mulf %5, %6 : vector<16x128xf32>
    %8 = arith.addf %3, %7 : vector<16x128xf32>
    %c0_7 = arith.constant 0 : index
    %c2 = arith.constant 2 : index
    %c0_8 = arith.constant 0 : index
    %c0_9 = arith.constant 0 : index
    %9 = vector.load %arg2[%c0_7, %c2, %c0_8, %c0_9] : memref<1x3x16x128xf32, #tpu.memory_space<vmem>>, vector<1x1x16x128xf32>
    %10 = vector.shape_cast %9 : vector<1x1x16x128xf32> to vector<16x128xf32>
    %cst_10 = arith.constant 1.140000e-01 : f32
    %11 = vector.broadcast %cst_10 : f32 to vector<16x128xf32>
    %12 = arith.mulf %10, %11 : vector<16x128xf32>
    %13 = arith.addf %8, %12 : vector<16x128xf32>
    %cst_11 = arith.constant 9.99999974E-5 : f32
    %14 = vector.broadcast %cst_11 : f32 to vector<16x128xf32>
    %15 = arith.addf %13, %14 : vector<16x128xf32>
    %16 = math.log %15 : vector<16x128xf32>
    %c0_12 = arith.constant 0 : index
    %c0_13 = arith.constant 0 : index
    %c0_14 = arith.constant 0 : index
    %c0_15 = arith.constant 0 : index
    %17 = vector.load %arg3[%c0_12, %c0_13, %c0_14, %c0_15] : memref<1x1x16x128xf32, #tpu.memory_space<vmem>>, vector<1x1x16x128xf32>
    %18 = vector.shape_cast %17 : vector<1x1x16x128xf32> to vector<16x128xf32>
    %c127_i32 = arith.constant 127 : i32
    %19 = tpu.dynamic_rotate %16 by %c127_i32 dim 1 : vector<16x128xf32>, i32 -> vector<16x128xf32>
    %c127_i32_16 = arith.constant 127 : i32
    %20 = tpu.dynamic_rotate %18 by %c127_i32_16 dim 1 : vector<16x128xf32>, i32 -> vector<16x128xf32>
    %c15_i32 = arith.constant 15 : i32
    %21 = tpu.dynamic_rotate %16 by %c15_i32 dim 0 : vector<16x128xf32>, i32 -> vector<16x128xf32>
    %c15_i32_17 = arith.constant 15 : i32
    %22 = tpu.dynamic_rotate %18 by %c15_i32_17 dim 0 : vector<16x128xf32>, i32 -> vector<16x128xf32>
    %23 = arith.subf %16, %19 : vector<16x128xf32>
    %24 = arith.subf %16, %21 : vector<16x128xf32>
    %25 = arith.subf %18, %20 : vector<16x128xf32>
    %26 = arith.subf %18, %22 : vector<16x128xf32>
    %27 = math.absf %23 : vector<16x128xf32>
    %28 = math.log %27 : vector<16x128xf32>
    %cst_18 = arith.constant 1.200000e+00 : f32
    %29 = vector.broadcast %cst_18 : f32 to vector<16x128xf32>
    %30 = arith.mulf %29, %28 : vector<16x128xf32>
    %31 = math.exp %30 : vector<16x128xf32>
    %cst_19 = arith.constant 9.99999974E-5 : f32
    %32 = vector.broadcast %cst_19 : f32 to vector<16x128xf32>
    %33 = arith.addf %31, %32 : vector<16x128xf32>
    %34 = tpu.reciprocal %33 : vector<16x128xf32> -> vector<16x128xf32>
    %cst_20 = arith.constant 1.500000e+00 : f32
    %35 = vector.broadcast %cst_20 : f32 to vector<16x128xf32>
    %36 = arith.mulf %35, %34 : vector<16x128xf32>
    %37 = arith.mulf %25, %25 : vector<16x128xf32>
    %38 = arith.mulf %36, %37 : vector<16x128xf32>
    %39 = math.absf %24 : vector<16x128xf32>
    %40 = math.log %39 : vector<16x128xf32>
    %cst_21 = arith.constant 1.200000e+00 : f32
    %41 = vector.broadcast %cst_21 : f32 to vector<16x128xf32>
    %42 = arith.mulf %41, %40 : vector<16x128xf32>
    %43 = math.exp %42 : vector<16x128xf32>
    %cst_22 = arith.constant 9.99999974E-5 : f32
    %44 = vector.broadcast %cst_22 : f32 to vector<16x128xf32>
    %45 = arith.addf %43, %44 : vector<16x128xf32>
    %46 = tpu.reciprocal %45 : vector<16x128xf32> -> vector<16x128xf32>
    %cst_23 = arith.constant 1.500000e+00 : f32
    %47 = vector.broadcast %cst_23 : f32 to vector<16x128xf32>
    %48 = arith.mulf %47, %46 : vector<16x128xf32>
    %49 = arith.mulf %26, %26 : vector<16x128xf32>
    %50 = arith.mulf %48, %49 : vector<16x128xf32>
    %51 = tpu.iota {dimensions = array<i32: 0>} : vector<16x1xi32>
    %c16_i32 = arith.constant 16 : i32
    %52 = arith.muli %arg1, %c16_i32 : i32
    %53 = vector.broadcast %52 : i32 to vector<16x1xi32>
    %54 = arith.addi %53, %51 : vector<16x1xi32>
    %c15_i32_24 = arith.constant 15 : i32
    %55 = vector.broadcast %c15_i32_24 : i32 to vector<16x1xi32>
    %56 = arith.cmpi slt, %54, %55 : vector<16x1xi32>
    %c15_i32_25 = arith.constant 15 : i32
    %57 = vector.broadcast %c15_i32_25 : i32 to vector<16x1xi32>
    %58 = arith.cmpi slt, %51, %57 : vector<16x1xi32>
    %59 = arith.andi %56, %58 : vector<16x1xi1>
    %60 = tpu.iota {dimensions = array<i32: 1>} : vector<1x128xi32>
    %c15_i32_26 = arith.constant 15 : i32
    %61 = vector.broadcast %c15_i32_26 : i32 to vector<1x128xi32>
    %62 = arith.cmpi slt, %60, %61 : vector<1x128xi32>
    %cst_27 = arith.constant 0.000000e+00 : f32
    %63 = vector.shape_cast %56 : vector<16x1xi1> to vector<16x1xi1>
    %64 = vector.broadcast %63 : vector<16x1xi1> to vector<16x128xi1>
    %65 = vector.broadcast %cst_27 : f32 to vector<16x128xf32>
    %66 = arith.select %64, %38, %65 : vector<16x128xi1>, vector<16x128xf32>
    %cst_28 = arith.constant 0.000000e+00 : f32
    %67 = vector.shape_cast %59 : vector<16x1xi1> to vector<16x1xi1>
    %68 = vector.broadcast %67 : vector<16x1xi1> to vector<16x128xi1>
    %69 = vector.broadcast %cst_28 : f32 to vector<16x128xf32>
    %70 = arith.select %68, %50, %69 : vector<16x128xi1>, vector<16x128xf32>
    %71 = arith.addf %66, %70 : vector<16x128xf32>
    %cst_29 = arith.constant 0.000000e+00 : f32
    %72 = vector.shape_cast %62 : vector<1x128xi1> to vector<1x128xi1>
    %73 = vector.broadcast %72 : vector<1x128xi1> to vector<16x128xi1>
    %74 = vector.broadcast %cst_29 : f32 to vector<16x128xf32>
    %75 = arith.select %73, %71, %74 : vector<16x128xi1>, vector<16x128xf32>
    %c0_30 = arith.constant 0 : index
    %c0_31 = arith.constant 0 : index
    %76 = vector.load %arg5[%c0_30, %c0_31] : memref<1x128xf32, #tpu.memory_space<vmem>>, vector<1x128xf32>
    %77 = vector.extract_strided_slice %16 {offsets = [0, 0], sizes = [1, 128], strides = [1, 1]} : vector<16x128xf32> to vector<1x128xf32>
    %78 = arith.subf %76, %77 : vector<1x128xf32>
    %c0_32 = arith.constant 0 : index
    %c0_33 = arith.constant 0 : index
    %79 = vector.load %arg6[%c0_32, %c0_33] : memref<1x128xf32, #tpu.memory_space<vmem>>, vector<1x128xf32>
    %80 = vector.extract_strided_slice %18 {offsets = [0, 0], sizes = [1, 128], strides = [1, 1]} : vector<16x128xf32> to vector<1x128xf32>
    %81 = arith.subf %79, %80 : vector<1x128xf32>
    %82 = math.absf %78 : vector<1x128xf32>
    %83 = math.log %82 : vector<1x128xf32>
    %cst_34 = arith.constant 1.200000e+00 : f32
    %84 = vector.broadcast %cst_34 : f32 to vector<1x128xf32>
    %85 = arith.mulf %84, %83 : vector<1x128xf32>
    %86 = math.exp %85 : vector<1x128xf32>
    %cst_35 = arith.constant 9.99999974E-5 : f32
    %87 = vector.broadcast %cst_35 : f32 to vector<1x128xf32>
    %88 = arith.addf %86, %87 : vector<1x128xf32>
    %89 = tpu.reciprocal %88 : vector<1x128xf32> -> vector<1x128xf32>
    %cst_36 = arith.constant 1.500000e+00 : f32
    %90 = vector.broadcast %cst_36 : f32 to vector<1x128xf32>
    %91 = arith.mulf %90, %89 : vector<1x128xf32>
    %92 = arith.mulf %81, %81 : vector<1x128xf32>
    %93 = arith.mulf %91, %92 : vector<1x128xf32>
    %c0_i32 = arith.constant 0 : i32
    %94 = arith.cmpi sgt, %arg1, %c0_i32 : i32
    %95 = vector.broadcast %94 : i1 to vector<1x128xi1>
    %96 = arith.andi %62, %95 : vector<1x128xi1>
    %cst_37 = arith.constant 0.000000e+00 : f32
    %97 = vector.broadcast %cst_37 : f32 to vector<1x128xf32>
    %98 = arith.select %96, %93, %97 : vector<1x128xi1>, vector<1x128xf32>
    %99 = vector.extract_strided_slice %16 {offsets = [15, 0], sizes = [1, 128], strides = [1, 1]} : vector<16x128xf32> to vector<1x128xf32>
    %c0_38 = arith.constant 0 : index
    %c0_39 = arith.constant 0 : index
    %100 = vector.load %arg5[%c0_38, %c0_39] : memref<1x128xf32, #tpu.memory_space<vmem>>, vector<1x128xf32>
    tpu.vector_store %arg5[%c0_38, %c0_39], %99 {strides = array<i32>} : memref<1x128xf32, #tpu.memory_space<vmem>>, vector<1x128xf32>,
    %101 = vector.extract_strided_slice %18 {offsets = [15, 0], sizes = [1, 128], strides = [1, 1]} : vector<16x128xf32> to vector<1x128xf32>
    %c0_40 = arith.constant 0 : index
    %c0_41 = arith.constant 0 : index
    %102 = vector.load %arg6[%c0_40, %c0_41] : memref<1x128xf32, #tpu.memory_space<vmem>>, vector<1x128xf32>
    tpu.vector_store %arg6[%c0_40, %c0_41], %101 {strides = array<i32>} : memref<1x128xf32, #tpu.memory_space<vmem>>, vector<1x128xf32>,
    %103 = vector.extract_strided_slice %75 {offsets = [0, 0], sizes = [8, 128], strides = [1, 1]} : vector<16x128xf32> to vector<8x128xf32>
    %104 = vector.extract_strided_slice %75 {offsets = [8, 0], sizes = [8, 128], strides = [1, 1]} : vector<16x128xf32> to vector<8x128xf32>
    %105 = arith.addf %103, %104 : vector<8x128xf32>
    %106 = tpu.iota {dimensions = array<i32: 0>} : vector<8x1xi32>
    %c0_i32_42 = arith.constant 0 : i32
    %107 = vector.broadcast %c0_i32_42 : i32 to vector<8x1xi32>
    %108 = arith.cmpi eq, %106, %107 : vector<8x1xi32>
    %cst_43 = arith.constant 0.000000e+00 : f32
    %109 = vector.shape_cast %108 : vector<8x1xi1> to vector<8x1xi1>
    %110 = vector.broadcast %109 : vector<8x1xi1> to vector<8x128xi1>
    %111 = vector.shape_cast %98 : vector<1x128xf32> to vector<1x128xf32>
    %112 = vector.broadcast %111 : vector<1x128xf32> to vector<8x128xf32>
    %113 = vector.broadcast %cst_43 : f32 to vector<8x128xf32>
    %114 = arith.select %110, %112, %113 : vector<8x128xi1>, vector<8x128xf32>
    %115 = arith.addf %105, %114 : vector<8x128xf32>
    %c0_44 = arith.constant 0 : index
    %c0_45 = arith.constant 0 : index
    %c0_46 = arith.constant 0 : index
    %c0_47 = arith.constant 0 : index
    %116 = vector.load %arg4[%c0_44, %c0_45, %c0_46, %c0_47] : memref<1x1x8x128xf32, #tpu.memory_space<vmem>>, vector<1x1x8x128xf32>
    %117 = vector.shape_cast %116 : vector<1x1x8x128xf32> to vector<8x128xf32>
    %118 = vector.shape_cast %115 : vector<8x128xf32> to vector<1x1x8x128xf32>
    tpu.vector_store %arg4[%c0_44, %c0_45, %c0_46, %c0_47], %118 {strides = array<i32>} : memref<1x1x8x128xf32, #tpu.memory_space<vmem>>, vector<1x1x8x128xf32>,
    return
  }
  func.func @transform_0(%arg0: i32, %arg1: i32) -> (i32, i32, i32, i32) {
    %c0_i32 = arith.constant 0 : i32
    %c0_i32_0 = arith.constant 0 : i32
    %c0_i32_1 = arith.constant 0 : i32
    return %arg0, %c0_i32, %arg1, %c0_i32_0 : i32, i32, i32, i32
  }
  func.func @transform_1(%arg0: i32, %arg1: i32) -> (i32, i32, i32, i32) {
    %c0_i32 = arith.constant 0 : i32
    %c0_i32_0 = arith.constant 0 : i32
    %c0_i32_1 = arith.constant 0 : i32
    return %arg0, %c0_i32, %arg1, %c0_i32_0 : i32, i32, i32, i32
  }
  func.func @transform_2(%arg0: i32, %arg1: i32) -> (i32, i32, i32, i32) {
    %c0_i32 = arith.constant 0 : i32
    %c0_i32_0 = arith.constant 0 : i32
    %c0_i32_1 = arith.constant 0 : i32
    return %arg0, %arg1, %c0_i32, %c0_i32_0 : i32, i32, i32, i32
  }
}

</mosaic_0001>

<bundles_post_ra>
// kernel: tpu_custom_call.1
= control target key start
LH: loop header
LB: loop body
LE: loop exit
PB: predicated region body
PF: predicated region fallthrough
CT: control target
= control target key end

     0   :  { %7 = vsyncpa [#allocation5], 0  ;;  %s1062_s0 = inlined_call_operand.hbm [shape: f32[2,3,16,16], index: 0, kind: input, shape index: {}]   ;;  %s1063_s1 = inlined_call_operand.hbm [shape: f32[2,1,16,16], index: 1, kind: input, shape index: {}]   ;;  %s1064_s2 = inlined_call_operand.hbm [shape: f32[2,1,8,128], index: 2, kind: output, shape index: {}]  }
   0x1   :  { %9 = vsyncpa [#allocation5 + $0x1], 0 }
   0x2   :  { %10 = vsyncpa [#allocation8], 0 }
   0x3   :  { %12 = vsyncpa [#allocation8 + $0x1], 0 }
   0x4   :  { %13 = vsyncpa [#allocation6], 0 }
   0x5   :  { %15 = vsyncpa [#allocation6 + $0x1], 0  ;;  %s804_s9 = smov 0   ;;  %s806_s10 = smov 0  }
   0x6   :  { %s808_s11 = smov 0   ;;  %s810_s12 = smov 0  }
   0x7   :  { %s812_s13 = smov 0   ;;  %s814_s14 = smov 0  }
   0x8 LB: > { %s512_s15 = sadd.s32 4294967295, %s780_s14   ;;  %s513_s16 = sadd.s32 4294967294, %s780_s14   ;;  %s780_s14 = sphi %s814_s14, %s21_s14   ;;  %s776_s13 = sphi %s812_s13, %s1082_s13   ;;  %s772_s12 = sphi %s810_s12, %s1081_s12   ;;  %s768_s11 = sphi %s808_s11, %s1080_s11   ;;  %s764_s10 = sphi %s806_s10, %s1079_s10   ;;  %s760_s9 = sphi %s804_s9, %s1078_s9  }
   0x9   : > { %s33_s17 = sadd.s32 1, %s776_s13  ;;  %s42_s18 = sadd.s32 1, %s768_s11 }
   0xa   : > { %p35_p0 = scmp.ge.s32.totalorder %s33_s17, 2  ;;  %p49_p1 = scmp.ne.s32.totalorder %s768_s11, %s764_s10 }
   0xb   : > { %p50_p2 = scmp.eq.s32.totalorder %s780_s14, 0  ;;  %p55_p3 = scmp.ne.s32.totalorder %s764_s10, %s760_s9 }
   0xc   : > { %s1084_s17 = smov (%p35_p0, %s33_s17), 0  ;;  %p56_p5 = scmp.eq.s32.totalorder %s512_s15, 0 }
   0xd   : > { %p845_p4 = por %p50_p2, %p49_p1  ;;  %s37_s20 = ssub.s32 %s776_s13, %s1084_s17 }
   0xe   : > { %p109_p6 = scmp.eq.s32.totalorder %s512_s15, 1  ;;  %p40_p7 = scmp.eq.s32.totalorder %s37_s20, 0 }
   0xf   : > { %p851_p8 = por %p56_p5, %p55_p3  ;;  %p115_p10 = scmp.eq.s32.totalorder %s513_s16, 1 }
  0x10   : > { %p855_p9 = por %p109_p6, %p49_p1  ;;  %p552_p13 = scmp.lt.s32.totalorder %s780_s14, 2 }
  0x11   : > { %s1068_s21 = scalar_select %p851_p8, 1, 0 }
  0x12   : > { %s1069_s22 = scalar_select %p855_p9, 1, 0 }
  0x13   : > { %s860_s23 = scalar_select %p40_p7, %s768_s11, %s42_s18  }
  0x14   : > { %p862_p11 = por %p115_p10, %p55_p3  ;;  %s869_s25 = sand.u32 1, %s768_s11  }
  0x15   : > { %s532_s26 = smul.u32 48, %s869_s25  ;;  %p875_p0 = pnand %p552_p13, %p845_p4 }
  0x16   : > { %s1070_s24 = scalar_select %p862_p11, 1, 0 }
  0x17   : > { %s533_s27 = smul.u32 768, %s776_s13  ;;  %s139_s4 = scalar_lea.vmem [#allocation4], %s532_s26 }
  0x18   : > { %s148_s5 = sshll.u32 %s139_s4, 4  ;;  %s136_s6 = scalar_lea.sflag [#allocation5], %s869_s25  ;;  %s884_s5 = int_to_ptr.vmem [resolvable:$true] %s148_s5 }
  0x19   : > { %s882_s3 = scalar_lea.hbm %s1062_s0, %s533_s27  ;;  %p636_p3 = pneg %p875_p0 }
  0x1a   : > { %s634_s7 = scalar_lea.hbm %s882_s3, 768  ;;  %s639_s16 = scalar_lea.hbm %s1062_s0, 1536 }
  0x1b   : > { %p635_p2 = scmp.ne.s32.totalorder %s882_s3, %s634_s7  ;;  %p640_p6 = scmp.lt.u32.totalorder %s882_s3, %s1062_s0 }
  0x1c   : > { %p641_p7 = scmp.lt.u32.totalorder %s639_s16, %s634_s7  ;;  %p643_p13 = scmp.lt.u32.totalorder %s634_s7, %s882_s3 }
  0x1d   : > { %p637_p4 = pnand %p636_p3, %p635_p2 }
  0x1e   : > { %p642_p10 = por %p641_p7, %p640_p6 }
  0x1f   : > { %p638_p5 = pneg %p637_p4 }
  0x20   : > { %p644_p12 = por %p643_p13, %p642_p10 }
  0x22   : > { %p645_p1 = pnand %p644_p12, %p638_p5 }
  0x24   : > { %648 = shalt.err (!%p645_p1)
}
  0x25   : > { %s649_s20 = scalar_lea.vmem %s884_s5, 768  ;;  %s782_s26 = smov [#allocation4]  }
  0x26   : > { %p650_p2 = scmp.ne.s32.totalorder %s884_s5, %s649_s20  ;;  %s654_s27 = sshll.u32 %s782_s26, 4  ;;  %s655_s27 = int_to_ptr.vmem [resolvable:$false] %s654_s27 }
  0x27   : > { %s656_s29 = scalar_lea.vmem %s655_s27, 1536  ;;  %p657_p9 = scmp.lt.s32.totalorder %s884_s5, %s655_s27 }
  0x28   : > { %p652_p4 = pnand %p650_p2, %p636_p3  ;;  %p658_p6 = scmp.lt.s32.totalorder %s656_s29, %s649_s20 }
  0x2a   : > { %p653_p11 = pneg %p652_p4  ;;  %p659_p7 = por %p658_p6, %p657_p9 }
  0x2c   : > { %p660_p10 = pnand %p659_p7, %p653_p11 }
  0x2e   : > { %663 = shalt.err (!%p660_p10)
}
  0x2f   : > { %s783_s30 = smov 128   ;;  %s784_s4 = smov 8  }
  0x30   : > { %544 = dma.hbm_to_vmem [thread:$0]  (!%p875_p0), %s882_s3, 768, %s884_s5, %s136_s6, %s783_s30, %s783_s30, %s784_s4  }
  0x31   : > { %p179_p9 = scmp.lt.s32.totalorder %s780_s14, 3  ;;  %s517_s7 = sshll.u32 %s869_s25, 4 }
  0x32   : > { %s531_s8 = sshll.u32 %s776_s13, 8  ;;  %p1072_p11 = scmp.ge.s32.totalorder %s780_s14, 1 }
  0x33   : > { %s930_s19 = scalar_lea.hbm %s1063_s1, %s531_s8  ;;  %s162_s20 = scalar_lea.vmem [#allocation7], %s517_s7 }
  0x34   : > { %p923_p12 = pnand %p1072_p11, %p179_p9  ;;  %s171_s26 = sshll.u32 %s162_s20, 4  ;;  %s932_s26 = int_to_ptr.vmem [resolvable:$true] %s171_s26 }
  0x35   : > { %s159_s3 = scalar_lea.sflag [#allocation8], %s869_s25  ;;  %s664_s5 = scalar_lea.hbm %s930_s19, 256 }
  0x36   : > { %p665_p1 = scmp.ne.s32.totalorder %s930_s19, %s664_s5  ;;  %s669_s29 = scalar_lea.hbm %s1063_s1, 512 }
  0x37   : > { %p670_p2 = scmp.lt.u32.totalorder %s930_s19, %s1063_s1  ;;  %p671_p4 = scmp.lt.u32.totalorder %s669_s29, %s664_s5 }
  0x38   : > { %p667_p5 = pnand %p665_p1, %p636_p3  ;;  %p673_p7 = scmp.lt.u32.totalorder %s664_s5, %s930_s19 }
  0x39   : > { %p672_p6 = por %p671_p4, %p670_p2 }
  0x3a   : > { %p668_p13 = pneg %p667_p5 }
  0x3b   : > { %p674_p10 = por %p673_p7, %p672_p6 }
  0x3d   : > { %p675_p9 = pnand %p674_p10, %p668_p13 }
  0x3f   : > { %678 = shalt.err (!%p675_p9)
}
  0x40   : > { %s679_s7 = scalar_lea.vmem %s932_s26, 256  ;;  %s785_s18 = smov [#allocation7]  }
  0x41   : > { %p680_p11 = scmp.ne.s32.totalorder %s932_s26, %s679_s7  ;;  %s684_s20 = sshll.u32 %s785_s18, 4  ;;  %s685_s20 = int_to_ptr.vmem [resolvable:$false] %s684_s20 }
  0x42   : > { %s686_s6 = scalar_lea.vmem %s685_s20, 512  ;;  %p687_p8 = scmp.lt.s32.totalorder %s932_s26, %s685_s20 }
  0x43   : > { %p682_p1 = pnand %p680_p11, %p636_p3  ;;  %p688_p2 = scmp.lt.s32.totalorder %s686_s6, %s679_s7 }
  0x45   : > { %p683_p5 = pneg %p682_p1  ;;  %p689_p4 = por %p688_p2, %p687_p8 }
  0x47   : > { %p690_p6 = pnand %p689_p4, %p683_p5 }
  0x49   : > { %693 = shalt.err (!%p690_p6)
}
  0x4a   : > { %547 = dma.hbm_to_vmem [thread:$0]  (!%p875_p0), %s930_s19, 256, %s932_s26, %s159_s3, %s783_s30, %s783_s30, %s784_s4  }
  0x4b   : > { %183 = sbr.rel (%p923_p12) target bundleno = 297 (0x129), region = 28  ;;  %s966_s5 = sand.u32 (!%p923_p12), 1, %s764_s10  }
  0x4c   : > { %s534_s27 = smul.u32 (!%p923_p12), 48, %s966_s5  ;;  %s186_s29 = scalar_lea.sflag (!%p923_p12), [#allocation5], %s966_s5 }
  0x4d   : > { %p1074_p8 = scmp.ne.s32.totalorder (!%p923_p12), %s1068_s21, 0 }
  0x4e   : > { %s189_s28 = scalar_lea.vmem (!%p923_p12), [#allocation4], %s534_s27 }
  0x52   : > { %747 = dma.done.wait (%p1074_p8), %s186_s29, 768  }
  0x53   : > { %749 = vsyncadd (%p1074_p8), %s186_s29, 4294966528  ;;  %s521_s25 = sshll.u32 %s966_s5, 4  ;;  %s195_s30 = scalar_lea.sflag [#allocation8], %s966_s5 }
  0x54   : > { %s198_s4 = scalar_lea.vmem [#allocation7], %s521_s25 }
  0x55   : > { %751 = dma.done.wait (%p1074_p8), %s195_s30, 256  }
  0x56   : > { %753 = vsyncadd (%p1074_p8), %s195_s30, 4294967040  ;;  %v227_v0 = vld [vmem:[%s189_s28 + $0x8] sm:$0xff]  ;;  %v524_v1 = vld [vmem:[%s189_s28 + $0x18] sm:$0xff]  ;;  %s786_s15 = smov 127   ;;  %v262_v24 = vlaneseq  ;;  %s522_s21 = sshll.u32 %s966_s5, 3 }
  0x57   : > { %v526_v2 = vld [vmem:[%s189_s28 + $0x28] sm:$0xff]  ;;  %v229_v3 = vmul.f32 0.299, %v227_v0  ;;  %v234_v4 = vmul.f32 0.587, %v524_v1  ;;  %v226_v6 = vld [vmem:[%s189_s28] sm:$0xff] }
  0x58   : > { %v241_v5 = vmul.f32 0.114, %v526_v2  ;;  %v523_v7 = vld [vmem:[%s189_s28 + $0x10] sm:$0xff]  ;;  %v525_v8 = vld [vmem:[%s189_s28 + $0x20] sm:$0xff]  ;;  %v228_v10 = vmul.f32 0.299, %v226_v6 }
  0x59   : > { %v236_v9 = vadd.f32 %v234_v4, %v229_v3  ;;  %v233_v11 = vmul.f32 0.587, %v523_v7  ;;  %v240_v12 = vmul.f32 0.114, %v525_v8  ;;  %v980_v13 = vld [vmem:[%s198_s4 + $0x8] sm:$0xff]  ;;  %v983_v16 = vld [vmem:[%s198_s4] sm:$0xff] }
  0x5a   : > { %258 = vrot.lane.b32.xlu1 %v980_v13, %s786_s15  ;;  %v987_v25 = vshrl.u32 %v262_v24, 7  ;;  %v268_v60 = vrot.slane %v980_v13, 1  ;;  %v267_v61 = vrot.slane %v983_v16, 1  ;;  %s528_s19 = sshll.u32 %s772_s12, 7  ;;  %s223_s26 = scalar_lea.vmem [#allocation9], %s522_s21 }
  0x5b   : > { %v243_v14 = vadd.f32 %v241_v5, %v236_v9  ;;  %v235_v15 = vadd.f32 %v233_v11, %v228_v10  ;;  %s404_s3 = sshll.u32 %s223_s26, 4  ;;  %s1013_s7 = scalar_lea.hbm %s1064_s2, %s528_s19  ;;  %s1015_s3 = int_to_ptr.vmem [resolvable:$true] %s404_s3 }
  0x5c   : > { %vm264_vm0 = vcmp.lt.s32.totalorder %v987_v25, 7  ;;  %v323_v7 = vadd.s32 8, %v987_v25  ;;  %vm379_vm4 = vcmp.eq.s32.totalorder %v987_v25, 0  ;;  %s390_s18 = scalar_lea.sflag [#allocation6], %s966_s5  ;;  %s694_s20 = scalar_lea.vmem %s1015_s3, 128 }
  0x5d   : > { %v245_v17 = vadd.f32 0.0001, %v243_v14  ;;  %v242_v18 = vadd.f32 %v240_v12, %v235_v15  ;;  %v270_v0 = vsel %vm264_vm0, %v268_v60, %v267_v61  ;;  %v269_v6 = vsel %vm264_vm0, %v267_v61, %v268_v60  ;;  %p695_p0 = scmp.ne.s32.totalorder %s1015_s3, %s694_s20  ;;  %p1075_p3 = scmp.ne.s32.totalorder %s1069_s22, 0 }
  0x5e   : > { %256 = vrot.lane.b32.xlu1 %v983_v16, %s786_s15  ;;  %v278_v3 = vsub.f32 %v980_v13, %v270_v0  ;;  %v277_v12 = vsub.f32 %v983_v16, %v269_v6  ;;  %vm329_vm1 = vcmp.lt.s32.totalorder %v323_v7, 15  ;;  %s788_s12 = smov [#allocation9]  }
  0x5f   : > { %606 = vlog2.f32 %v245_v17  ;;  %v244_v19 = vadd.f32 0.0001, %v242_v18  ;;  %vm333_vm2 = vmand %vm329_vm1, %vm329_vm1  ;;  %p696_p12 = pnand %p695_p0, %p1075_p3  ;;  %s698_s6 = sshll.u32 %s788_s12, 4  ;;  %s699_s6 = int_to_ptr.vmem [resolvable:$false] %s698_s6 }
  0x60   : > { %v320_v10 = vmul.f32 %v278_v3, %v278_v3  ;;  %s700_s27 = scalar_lea.vmem %s699_s6, 256  ;;  %p701_p7 = scmp.lt.s32.totalorder %s1015_s3, %s699_s6 }
  0x61   : > { %608 = vlog2.f32 %v244_v19  ;;  %p697_p13 = pneg %p696_p12  ;;  %p702_p10 = scmp.lt.s32.totalorder %s700_s27, %s694_s20 }
  0x63   : > { %p703_p9 = por %p702_p10, %p701_p7 }
  0x65   : > { %p704_p11 = pnand %p703_p9, %p697_p13 }
  0x69   : > { %v607_v20 = vpop.eup %606 }
  0x6a   : > { %v249_v21 = vmul.f32 0.6931472, %v607_v20  ;;  %v319_v20 = vmul.f32 %v277_v12, %v277_v12 }
  0x6b   : > { %v609_v22 = vpop.eup %608 }
  0x6c   : > { %254 = vrot.lane.b32.xlu0 %v249_v21, %s786_s15  ;;  %v247_v23 = vmul.f32 0.6931472, %v609_v22  ;;  %v261_v27 = vrot.slane %v249_v21, 1 }
  0x6e   : > { %v260_v26 = vrot.slane %v247_v23, 1 }
  0x70   : > { %252 = vrot.lane.b32.xlu0 %v247_v23, %s786_s15  ;;  %v266_v28 = vsel %vm264_vm0, %v261_v27, %v260_v26  ;;  %v265_v30 = vsel %vm264_vm0, %v260_v26, %v261_v27 }
  0x71   : > { %v274_v29 = vsub.f32 %v249_v21, %v266_v28  ;;  %v273_v32 = vsub.f32 %v247_v23, %v265_v30  ;;  %v335_v28 = vand.u32 127, %v262_v24 }
  0x73   : > { %v302_v31 = vand.u32 2147483647, %v274_v29  ;;  %v301_v33 = vand.u32 2147483647, %v273_v32  ;;  %vm336_vm3 = vcmp.lt.s32.totalorder %v335_v28, 15 }
  0x75   : > { %610 = vlog2.f32 %v302_v31 }
  0x76   : > { %612 = vlog2.f32 %v301_v33  ;;  %v787_v33 = vmov 0.0  }
  0x7f   : > { %v611_v34 = vpop.eup %610 }
  0x80   : > { %v306_v35 = vmul.f32 0.6931472, %v611_v34  ;;  %v613_v37 = vpop.eup %612 }
  0x81   : > { %v304_v42 = vmul.f32 0.6931472, %v613_v37 }
  0x82   : > { %v308_v40 = vmul.f32 1.2, %v306_v35 }
  0x83   : > { %v307_v46 = vmul.f32 1.2, %v304_v42 }
  0x84   : > { %v311_v45 = vmul.f32 1.442695, %v308_v40 }
  0x85   : > { %v309_v47 = vmul.f32 1.442695, %v307_v46 }
  0xcc   : > { %v259_v1 = vpop.permute.xlu1 %258 }
  0xcd   : > { %v276_v8 = vsub.f32 %v980_v13, %v259_v1  ;;  %v384_v13 = vsub.s32 0, %v987_v25 }
  0xcf   : > { %v298_v15 = vmul.f32 %v276_v8, %v276_v8  ;;  %v385_v34 = vrot.slane %v787_v33, %v384_v13 }
  0xd0   : > { %v257_v11 = vpop.permute.xlu1 %256 }
  0xd1   : > { %v275_v17 = vsub.f32 %v983_v16, %v257_v11 }
  0xd3   : > { %v297_v26 = vmul.f32 %v275_v17, %v275_v17 }
  0xde   : > { %v255_v36 = vpop.permute.xlu0 %254 }
  0xdf   : > { %v272_v38 = vsub.f32 %v249_v21, %v255_v36 }
  0xe1   : > { %v280_v39 = vand.u32 2147483647, %v272_v38  ;;  %v386_v38 = vsel %vm379_vm4, %v385_v34, 0.0 }
  0xe2   : > { %v253_v41 = vpop.permute.xlu0 %252 }
  0xe3   : > { %614 = vlog2.f32 %v280_v39  ;;  %v271_v43 = vsub.f32 %v247_v23, %v253_v41 }
  0xe5   : > { %v279_v44 = vand.u32 2147483647, %v271_v43 }
  0xe7   : > { %616 = vlog2.f32 %v279_v44 }
  0xe8   : > { %618 = vpow2.f32 %v311_v45 }
  0xe9   : > { %620 = vpow2.f32 %v309_v47 }
  0xed   : > { %v615_v48 = vpop.eup %614 }
  0xee   : > { %v284_v49 = vmul.f32 0.6931472, %v615_v48 }
  0xf0   : > { %v286_v50 = vmul.f32 1.2, %v284_v49 }
  0xf1   : > { %v617_v51 = vpop.eup %616 }
  0xf2   : > { %v289_v52 = vmul.f32 1.442695, %v286_v50  ;;  %v282_v53 = vmul.f32 0.6931472, %v617_v51  ;;  %v619_v54 = vpop.eup %618 }
  0xf3   : > { %v314_v57 = vadd.f32 0.0001, %v619_v54  ;;  %v621_v58 = vpop.eup %620 }
  0xf4   : > { %622 = vpow2.f32 %v289_v52  ;;  %v285_v55 = vmul.f32 1.2, %v282_v53  ;;  %v313_v59 = vadd.f32 0.0001, %v621_v58 }
  0xf6   : > { %v287_v56 = vmul.f32 1.442695, %v285_v55 }
  0xf8   : > { %624 = vpow2.f32 %v287_v56 }
  0xf9   : > { %626 = vrcp.f32 %v314_v57 }
  0xfa   : > { %628 = vrcp.f32 %v313_v59 }
  0xfe   : > { %v623_v62 = vpop.eup %622 }
  0xff   : > { %v292_v63 = vadd.f32 0.0001, %v623_v62 }
 0x101   : > { %630 = vrcp.f32 %v292_v63 }
 0x102   : > { %v625_v2 = vpop.eup %624 }
 0x103   : > { %v291_v4 = vadd.f32 0.0001, %v625_v2  ;;  %v627_v5 = vpop.eup %626 }
 0x104   : > { %v318_v9 = vmul.f32 1.5, %v627_v5  ;;  %v629_v14 = vpop.eup %628 }
 0x105   : > { %632 = vrcp.f32 %v291_v4  ;;  %v317_v22 = vmul.f32 1.5, %v629_v14 }
 0x106   : > { %v322_v19 = vmul.f32 %v320_v10, %v318_v9 }
 0x107   : > { %v321_v32 = vmul.f32 %v319_v20, %v317_v22 }
 0x108   : > { %v348_v29 = vsel %vm333_vm2, %v322_v19, 0.0 }
 0x10b   : > { %v631_v18 = vpop.eup %630 }
 0x10c   : > { %v296_v21 = vmul.f32 1.5, %v631_v18 }
 0x10e   : > { %v300_v23 = vmul.f32 %v298_v15, %v296_v21 }
 0x10f   : > { %v633_v27 = vpop.eup %632 }
 0x110   : > { %v342_v30 = vsel %vm329_vm1, %v300_v23, 0.0  ;;  %v295_v31 = vmul.f32 1.5, %v633_v27 }
 0x111   : > { %v350_v16 = vadd.f32 %v348_v29, %v342_v30 }
 0x112   : > { %v299_v35 = vmul.f32 %v297_v26, %v295_v31 }
 0x113   : > { %v354_v37 = vsel %vm336_vm3, %v350_v16, 0.0 }
 0x114   : > { %v349_v36 = vadd.f32 %v321_v32, %v299_v35 }
 0x116   : > { %v353_v39 = vsel %vm336_vm3, %v349_v36, 0.0 }
 0x117   : > { %v378_v24 = vadd.f32 %v354_v37, %v353_v39 }
 0x119   : > { %v387_v40 = vadd.f32 %v386_v38, %v378_v24 }
 0x11b   : > { %388 = vst [vmem:[%s223_s26] sm:$0xff] %v387_v40 }
 0x11c   : > { %707 = shalt.err (!%p704_p11)
}
 0x11d   : > { %s708_s5 = scalar_lea.hbm %s1013_s7, 128  ;;  %s712_s25 = scalar_lea.hbm %s1064_s2, 256 }
 0x11e   : > { %p709_p1 = scmp.ne.s32.totalorder %s1013_s7, %s708_s5  ;;  %p713_p4 = scmp.lt.u32.totalorder %s1013_s7, %s1064_s2 }
 0x11f   : > { %p714_p6 = scmp.lt.u32.totalorder %s712_s25, %s708_s5  ;;  %p716_p0 = scmp.lt.u32.totalorder %s708_s5, %s1013_s7 }
 0x120   : > { %p710_p5 = pnand %p709_p1, %p1075_p3 }
 0x121   : > { %p715_p8 = por %p714_p6, %p713_p4 }
 0x122   : > { %p711_p2 = pneg %p710_p5 }
 0x123   : > { %p717_p12 = por %p716_p0, %p715_p8 }
 0x125   : > { %p718_p13 = pnand %p717_p12, %p711_p2 }
 0x127   : > { %721 = shalt.err (!%p718_p13)
}
 0x128   : > { %539 = dma.vmem_to_hbm [thread:$0]  (%p1075_p3), %s1015_s3, 128, %s1013_s7, %s390_s18  }
 0x129 PF: > { %s416_s15 = sand.u32 1, %s760_s9   ;;  %p1076_p7 = scmp.ne.s32.totalorder %s1070_s24, 0 }
 0x12a   : > { %p1077_p10 = scmp.ge.s32.totalorder %s780_s14, 2  ;;  %s417_s21 = scalar_lea.sflag [#allocation6], %s416_s15 }
 0x12c   : > { %p549_p9 = pnand %p1077_p10, %p1076_p7 }
 0x12e   : > { %755 = dma.done.wait (!%p549_p9), %s417_s21, 128  }
 0x12f   : > { %757 = vsyncadd (!%p549_p9), %s417_s21, 4294967168  ;;  %s21_s14 = sadd.s32 1, %s780_s14   ;;  %s1078_s9 = smov %s764_s10 }
 0x130   : > { %p18_p11 = scmp.ge.s32.totalorder %s21_s14, 4   ;;  %s1079_s10 = smov %s768_s11 }
 0x131   : > { %s1080_s11 = smov %s860_s23  ;;  %s1081_s12 = smov %s776_s13 }
 0x132   : > { %s1082_s13 = smov %s1084_s17  ;;  %20 = sbr.rel (!%p18_p11) target bundleno = 8 (0x8), region = 88 }
 0x139   :  { %422 = vsyncpa [#allocation5], 1 }
 0x13a   :  { %424 = vsyncpa [#allocation5 + $0x1], 1 }
 0x13b   :  { %425 = vsyncpa [#allocation8], 1 }
 0x13c   :  { %427 = vsyncpa [#allocation8 + $0x1], 1 }
 0x13d   :  { %428 = vsyncpa [#allocation6], 1 }
 0x13e   :  { %430 = vsyncpa [#allocation6 + $0x1], 1 }

// kernel: tpu_custom_call.1
= control target key start
LH: loop header
LB: loop body
LE: loop exit
PB: predicated region body
PF: predicated region fallthrough
CT: control target
= control target key end

     0   :  { %7 = vsyncpa [#allocation5], 0  ;;  %s1062_s0 = inlined_call_operand.hbm [shape: f32[2,3,16,128], index: 0, kind: input, shape index: {}]   ;;  %s1063_s1 = inlined_call_operand.hbm [shape: f32[2,1,16,128], index: 1, kind: input, shape index: {}]   ;;  %s1064_s2 = inlined_call_operand.hbm [shape: f32[2,1,8,128], index: 2, kind: output, shape index: {}]  }
   0x1   :  { %9 = vsyncpa [#allocation5 + $0x1], 0 }
   0x2   :  { %10 = vsyncpa [#allocation8], 0 }
   0x3   :  { %12 = vsyncpa [#allocation8 + $0x1], 0 }
   0x4   :  { %13 = vsyncpa [#allocation6], 0 }
   0x5   :  { %15 = vsyncpa [#allocation6 + $0x1], 0  ;;  %s804_s9 = smov 0   ;;  %s806_s10 = smov 0  }
   0x6   :  { %s808_s11 = smov 0   ;;  %s810_s12 = smov 0  }
   0x7   :  { %s812_s13 = smov 0   ;;  %s814_s14 = smov 0  }
   0x8 LB: > { %s512_s15 = sadd.s32 4294967295, %s780_s14   ;;  %s513_s16 = sadd.s32 4294967294, %s780_s14   ;;  %s780_s14 = sphi %s814_s14, %s21_s14   ;;  %s776_s13 = sphi %s812_s13, %s1082_s13   ;;  %s772_s12 = sphi %s810_s12, %s1081_s12   ;;  %s768_s11 = sphi %s808_s11, %s1080_s11   ;;  %s764_s10 = sphi %s806_s10, %s1079_s10   ;;  %s760_s9 = sphi %s804_s9, %s1078_s9  }
   0x9   : > { %s33_s17 = sadd.s32 1, %s776_s13  ;;  %s42_s18 = sadd.s32 1, %s768_s11 }
   0xa   : > { %p35_p0 = scmp.ge.s32.totalorder %s33_s17, 2  ;;  %p49_p1 = scmp.ne.s32.totalorder %s768_s11, %s764_s10 }
   0xb   : > { %p50_p2 = scmp.eq.s32.totalorder %s780_s14, 0  ;;  %p55_p3 = scmp.ne.s32.totalorder %s764_s10, %s760_s9 }
   0xc   : > { %s1084_s17 = smov (%p35_p0, %s33_s17), 0  ;;  %p56_p5 = scmp.eq.s32.totalorder %s512_s15, 0 }
   0xd   : > { %p845_p4 = por %p50_p2, %p49_p1  ;;  %s37_s20 = ssub.s32 %s776_s13, %s1084_s17 }
   0xe   : > { %p109_p6 = scmp.eq.s32.totalorder %s512_s15, 1  ;;  %p40_p7 = scmp.eq.s32.totalorder %s37_s20, 0 }
   0xf   : > { %p851_p8 = por %p56_p5, %p55_p3  ;;  %p115_p10 = scmp.eq.s32.totalorder %s513_s16, 1 }
  0x10   : > { %p855_p9 = por %p109_p6, %p49_p1  ;;  %p552_p13 = scmp.lt.s32.totalorder %s780_s14, 2 }
  0x11   : > { %s1068_s21 = scalar_select %p851_p8, 1, 0 }
  0x12   : > { %s1069_s22 = scalar_select %p855_p9, 1, 0 }
  0x13   : > { %s860_s23 = scalar_select %p40_p7, %s768_s11, %s42_s18  }
  0x14   : > { %p862_p11 = por %p115_p10, %p55_p3  ;;  %s869_s25 = sand.u32 1, %s768_s11  }
  0x15   : > { %s532_s26 = smul.u32 48, %s869_s25  ;;  %p875_p0 = pnand %p552_p13, %p845_p4 }
  0x16   : > { %s1070_s24 = scalar_select %p862_p11, 1, 0 }
  0x17   : > { %s533_s27 = smul.u32 768, %s776_s13  ;;  %s139_s4 = scalar_lea.vmem [#allocation4], %s532_s26 }
  0x18   : > { %s148_s5 = sshll.u32 %s139_s4, 4  ;;  %s136_s6 = scalar_lea.sflag [#allocation5], %s869_s25  ;;  %s884_s5 = int_to_ptr.vmem [resolvable:$true] %s148_s5 }
  0x19   : > { %s882_s3 = scalar_lea.hbm %s1062_s0, %s533_s27  ;;  %p636_p3 = pneg %p875_p0 }
  0x1a   : > { %s634_s7 = scalar_lea.hbm %s882_s3, 768  ;;  %s639_s16 = scalar_lea.hbm %s1062_s0, 1536 }
  0x1b   : > { %p635_p2 = scmp.ne.s32.totalorder %s882_s3, %s634_s7  ;;  %p640_p6 = scmp.lt.u32.totalorder %s882_s3, %s1062_s0 }
  0x1c   : > { %p641_p7 = scmp.lt.u32.totalorder %s639_s16, %s634_s7  ;;  %p643_p13 = scmp.lt.u32.totalorder %s634_s7, %s882_s3 }
  0x1d   : > { %p637_p4 = pnand %p636_p3, %p635_p2 }
  0x1e   : > { %p642_p10 = por %p641_p7, %p640_p6 }
  0x1f   : > { %p638_p5 = pneg %p637_p4 }
  0x20   : > { %p644_p12 = por %p643_p13, %p642_p10 }
  0x22   : > { %p645_p1 = pnand %p644_p12, %p638_p5 }
  0x24   : > { %648 = shalt.err (!%p645_p1)
}
  0x25   : > { %s649_s20 = scalar_lea.vmem %s884_s5, 768  ;;  %s782_s26 = smov [#allocation4]  }
  0x26   : > { %p650_p2 = scmp.ne.s32.totalorder %s884_s5, %s649_s20  ;;  %s654_s27 = sshll.u32 %s782_s26, 4  ;;  %s655_s27 = int_to_ptr.vmem [resolvable:$false] %s654_s27 }
  0x27   : > { %s656_s29 = scalar_lea.vmem %s655_s27, 1536  ;;  %p657_p9 = scmp.lt.s32.totalorder %s884_s5, %s655_s27 }
  0x28   : > { %p652_p4 = pnand %p650_p2, %p636_p3  ;;  %p658_p6 = scmp.lt.s32.totalorder %s656_s29, %s649_s20 }
  0x2a   : > { %p653_p11 = pneg %p652_p4  ;;  %p659_p7 = por %p658_p6, %p657_p9 }
  0x2c   : > { %p660_p10 = pnand %p659_p7, %p653_p11 }
  0x2e   : > { %663 = shalt.err (!%p660_p10)
}
  0x2f   : > { %s783_s30 = smov 128   ;;  %s784_s4 = smov 8  }
  0x30   : > { %544 = dma.hbm_to_vmem [thread:$0]  (!%p875_p0), %s882_s3, 768, %s884_s5, %s136_s6, %s783_s30, %s783_s30, %s784_s4  }
  0x31   : > { %p179_p9 = scmp.lt.s32.totalorder %s780_s14, 3  ;;  %s517_s7 = sshll.u32 %s869_s25, 4 }
  0x32   : > { %s531_s8 = sshll.u32 %s776_s13, 8  ;;  %p1072_p11 = scmp.ge.s32.totalorder %s780_s14, 1 }
  0x33   : > { %s930_s19 = scalar_lea.hbm %s1063_s1, %s531_s8  ;;  %s162_s20 = scalar_lea.vmem [#allocation7], %s517_s7 }
  0x34   : > { %p923_p12 = pnand %p1072_p11, %p179_p9  ;;  %s171_s26 = sshll.u32 %s162_s20, 4  ;;  %s932_s26 = int_to_ptr.vmem [resolvable:$true] %s171_s26 }
  0x35   : > { %s159_s3 = scalar_lea.sflag [#allocation8], %s869_s25  ;;  %s664_s5 = scalar_lea.hbm %s930_s19, 256 }
  0x36   : > { %p665_p1 = scmp.ne.s32.totalorder %s930_s19, %s664_s5  ;;  %s669_s29 = scalar_lea.hbm %s1063_s1, 512 }
  0x37   : > { %p670_p2 = scmp.lt.u32.totalorder %s930_s19, %s1063_s1  ;;  %p671_p4 = scmp.lt.u32.totalorder %s669_s29, %s664_s5 }
  0x38   : > { %p667_p5 = pnand %p665_p1, %p636_p3  ;;  %p673_p7 = scmp.lt.u32.totalorder %s664_s5, %s930_s19 }
  0x39   : > { %p672_p6 = por %p671_p4, %p670_p2 }
  0x3a   : > { %p668_p13 = pneg %p667_p5 }
  0x3b   : > { %p674_p10 = por %p673_p7, %p672_p6 }
  0x3d   : > { %p675_p9 = pnand %p674_p10, %p668_p13 }
  0x3f   : > { %678 = shalt.err (!%p675_p9)
}
  0x40   : > { %s679_s7 = scalar_lea.vmem %s932_s26, 256  ;;  %s785_s18 = smov [#allocation7]  }
  0x41   : > { %p680_p11 = scmp.ne.s32.totalorder %s932_s26, %s679_s7  ;;  %s684_s20 = sshll.u32 %s785_s18, 4  ;;  %s685_s20 = int_to_ptr.vmem [resolvable:$false] %s684_s20 }
  0x42   : > { %s686_s6 = scalar_lea.vmem %s685_s20, 512  ;;  %p687_p8 = scmp.lt.s32.totalorder %s932_s26, %s685_s20 }
  0x43   : > { %p682_p1 = pnand %p680_p11, %p636_p3  ;;  %p688_p2 = scmp.lt.s32.totalorder %s686_s6, %s679_s7 }
  0x45   : > { %p683_p5 = pneg %p682_p1  ;;  %p689_p4 = por %p688_p2, %p687_p8 }
  0x47   : > { %p690_p6 = pnand %p689_p4, %p683_p5 }
  0x49   : > { %693 = shalt.err (!%p690_p6)
}
  0x4a   : > { %547 = dma.hbm_to_vmem [thread:$0]  (!%p875_p0), %s930_s19, 256, %s932_s26, %s159_s3, %s783_s30, %s783_s30, %s784_s4  }
  0x4b   : > { %183 = sbr.rel (%p923_p12) target bundleno = 297 (0x129), region = 28  ;;  %s966_s5 = sand.u32 (!%p923_p12), 1, %s764_s10  }
  0x4c   : > { %s534_s27 = smul.u32 (!%p923_p12), 48, %s966_s5  ;;  %s186_s29 = scalar_lea.sflag (!%p923_p12), [#allocation5], %s966_s5 }
  0x4d   : > { %p1074_p8 = scmp.ne.s32.totalorder (!%p923_p12), %s1068_s21, 0 }
  0x4e   : > { %s189_s28 = scalar_lea.vmem (!%p923_p12), [#allocation4], %s534_s27 }
  0x52   : > { %747 = dma.done.wait (%p1074_p8), %s186_s29, 768  }
  0x53   : > { %749 = vsyncadd (%p1074_p8), %s186_s29, 4294966528  ;;  %s521_s25 = sshll.u32 %s966_s5, 4  ;;  %s195_s30 = scalar_lea.sflag [#allocation8], %s966_s5 }
  0x54   : > { %s198_s4 = scalar_lea.vmem [#allocation7], %s521_s25 }
  0x55   : > { %751 = dma.done.wait (%p1074_p8), %s195_s30, 256  }
  0x56   : > { %753 = vsyncadd (%p1074_p8), %s195_s30, 4294967040  ;;  %v227_v0 = vld [vmem:[%s189_s28 + $0x8] sm:$0xff]  ;;  %v524_v1 = vld [vmem:[%s189_s28 + $0x18] sm:$0xff]  ;;  %s786_s15 = smov 127   ;;  %v262_v24 = vlaneseq  ;;  %s522_s21 = sshll.u32 %s966_s5, 3 }
  0x57   : > { %v526_v2 = vld [vmem:[%s189_s28 + $0x28] sm:$0xff]  ;;  %v229_v3 = vmul.f32 0.299, %v227_v0  ;;  %v234_v4 = vmul.f32 0.587, %v524_v1  ;;  %v226_v6 = vld [vmem:[%s189_s28] sm:$0xff] }
  0x58   : > { %v241_v5 = vmul.f32 0.114, %v526_v2  ;;  %v523_v7 = vld [vmem:[%s189_s28 + $0x10] sm:$0xff]  ;;  %v525_v8 = vld [vmem:[%s189_s28 + $0x20] sm:$0xff]  ;;  %v228_v10 = vmul.f32 0.299, %v226_v6 }
  0x59   : > { %v236_v9 = vadd.f32 %v234_v4, %v229_v3  ;;  %v233_v11 = vmul.f32 0.587, %v523_v7  ;;  %v240_v12 = vmul.f32 0.114, %v525_v8  ;;  %v980_v13 = vld [vmem:[%s198_s4 + $0x8] sm:$0xff]  ;;  %v983_v16 = vld [vmem:[%s198_s4] sm:$0xff] }
  0x5a   : > { %258 = vrot.lane.b32.xlu1 %v980_v13, %s786_s15  ;;  %v987_v25 = vshrl.u32 %v262_v24, 7  ;;  %v268_v60 = vrot.slane %v980_v13, 1  ;;  %v267_v61 = vrot.slane %v983_v16, 1  ;;  %s528_s19 = sshll.u32 %s772_s12, 7  ;;  %s223_s26 = scalar_lea.vmem [#allocation9], %s522_s21 }
  0x5b   : > { %v243_v14 = vadd.f32 %v241_v5, %v236_v9  ;;  %v235_v15 = vadd.f32 %v233_v11, %v228_v10  ;;  %s404_s3 = sshll.u32 %s223_s26, 4  ;;  %s1013_s7 = scalar_lea.hbm %s1064_s2, %s528_s19  ;;  %s1015_s3 = int_to_ptr.vmem [resolvable:$true] %s404_s3 }
  0x5c   : > { %vm264_vm0 = vcmp.lt.s32.totalorder %v987_v25, 7  ;;  %v323_v7 = vadd.s32 8, %v987_v25  ;;  %vm379_vm4 = vcmp.eq.s32.totalorder %v987_v25, 0  ;;  %s390_s18 = scalar_lea.sflag [#allocation6], %s966_s5  ;;  %s694_s20 = scalar_lea.vmem %s1015_s3, 128 }
  0x5d   : > { %v245_v17 = vadd.f32 0.0001, %v243_v14  ;;  %v242_v18 = vadd.f32 %v240_v12, %v235_v15  ;;  %v270_v0 = vsel %vm264_vm0, %v268_v60, %v267_v61  ;;  %v269_v6 = vsel %vm264_vm0, %v267_v61, %v268_v60  ;;  %p695_p0 = scmp.ne.s32.totalorder %s1015_s3, %s694_s20  ;;  %p1075_p3 = scmp.ne.s32.totalorder %s1069_s22, 0 }
  0x5e   : > { %256 = vrot.lane.b32.xlu1 %v983_v16, %s786_s15  ;;  %v278_v3 = vsub.f32 %v980_v13, %v270_v0  ;;  %v277_v12 = vsub.f32 %v983_v16, %v269_v6  ;;  %vm329_vm1 = vcmp.lt.s32.totalorder %v323_v7, 15  ;;  %s788_s12 = smov [#allocation9]  }
  0x5f   : > { %606 = vlog2.f32 %v245_v17  ;;  %v244_v19 = vadd.f32 0.0001, %v242_v18  ;;  %vm333_vm2 = vmand %vm329_vm1, %vm329_vm1  ;;  %p696_p12 = pnand %p695_p0, %p1075_p3  ;;  %s698_s6 = sshll.u32 %s788_s12, 4  ;;  %s699_s6 = int_to_ptr.vmem [resolvable:$false] %s698_s6 }
  0x60   : > { %v320_v10 = vmul.f32 %v278_v3, %v278_v3  ;;  %s700_s27 = scalar_lea.vmem %s699_s6, 256  ;;  %p701_p7 = scmp.lt.s32.totalorder %s1015_s3, %s699_s6 }
  0x61   : > { %608 = vlog2.f32 %v244_v19  ;;  %p697_p13 = pneg %p696_p12  ;;  %p702_p10 = scmp.lt.s32.totalorder %s700_s27, %s694_s20 }
  0x63   : > { %p703_p9 = por %p702_p10, %p701_p7 }
  0x65   : > { %p704_p11 = pnand %p703_p9, %p697_p13 }
  0x69   : > { %v607_v20 = vpop.eup %606 }
  0x6a   : > { %v249_v21 = vmul.f32 0.6931472, %v607_v20  ;;  %v319_v20 = vmul.f32 %v277_v12, %v277_v12 }
  0x6b   : > { %v609_v22 = vpop.eup %608 }
  0x6c   : > { %254 = vrot.lane.b32.xlu0 %v249_v21, %s786_s15  ;;  %v247_v23 = vmul.f32 0.6931472, %v609_v22  ;;  %v261_v27 = vrot.slane %v249_v21, 1 }
  0x6e   : > { %v260_v26 = vrot.slane %v247_v23, 1 }
  0x70   : > { %252 = vrot.lane.b32.xlu0 %v247_v23, %s786_s15  ;;  %v266_v28 = vsel %vm264_vm0, %v261_v27, %v260_v26  ;;  %v265_v30 = vsel %vm264_vm0, %v260_v26, %v261_v27 }
  0x71   : > { %v274_v29 = vsub.f32 %v249_v21, %v266_v28  ;;  %v273_v32 = vsub.f32 %v247_v23, %v265_v30  ;;  %v335_v28 = vand.u32 127, %v262_v24 }
  0x73   : > { %v302_v31 = vand.u32 2147483647, %v274_v29  ;;  %v301_v33 = vand.u32 2147483647, %v273_v32  ;;  %vm336_vm3 = vcmp.lt.s32.totalorder %v335_v28, 15 }
  0x75   : > { %610 = vlog2.f32 %v302_v31 }
  0x76   : > { %612 = vlog2.f32 %v301_v33  ;;  %v787_v33 = vmov 0.0  }
  0x7f   : > { %v611_v34 = vpop.eup %610 }
  0x80   : > { %v306_v35 = vmul.f32 0.6931472, %v611_v34  ;;  %v613_v37 = vpop.eup %612 }
  0x81   : > { %v304_v42 = vmul.f32 0.6931472, %v613_v37 }
  0x82   : > { %v308_v40 = vmul.f32 1.2, %v306_v35 }
  0x83   : > { %v307_v46 = vmul.f32 1.2, %v304_v42 }
  0x84   : > { %v311_v45 = vmul.f32 1.442695, %v308_v40 }
  0x85   : > { %v309_v47 = vmul.f32 1.442695, %v307_v46 }
  0xcc   : > { %v259_v1 = vpop.permute.xlu1 %258 }
  0xcd   : > { %v276_v8 = vsub.f32 %v980_v13, %v259_v1  ;;  %v384_v13 = vsub.s32 0, %v987_v25 }
  0xcf   : > { %v298_v15 = vmul.f32 %v276_v8, %v276_v8  ;;  %v385_v34 = vrot.slane %v787_v33, %v384_v13 }
  0xd0   : > { %v257_v11 = vpop.permute.xlu1 %256 }
  0xd1   : > { %v275_v17 = vsub.f32 %v983_v16, %v257_v11 }
  0xd3   : > { %v297_v26 = vmul.f32 %v275_v17, %v275_v17 }
  0xde   : > { %v255_v36 = vpop.permute.xlu0 %254 }
  0xdf   : > { %v272_v38 = vsub.f32 %v249_v21, %v255_v36 }
  0xe1   : > { %v280_v39 = vand.u32 2147483647, %v272_v38  ;;  %v386_v38 = vsel %vm379_vm4, %v385_v34, 0.0 }
  0xe2   : > { %v253_v41 = vpop.permute.xlu0 %252 }
  0xe3   : > { %614 = vlog2.f32 %v280_v39  ;;  %v271_v43 = vsub.f32 %v247_v23, %v253_v41 }
  0xe5   : > { %v279_v44 = vand.u32 2147483647, %v271_v43 }
  0xe7   : > { %616 = vlog2.f32 %v279_v44 }
  0xe8   : > { %618 = vpow2.f32 %v311_v45 }
  0xe9   : > { %620 = vpow2.f32 %v309_v47 }
  0xed   : > { %v615_v48 = vpop.eup %614 }
  0xee   : > { %v284_v49 = vmul.f32 0.6931472, %v615_v48 }
  0xf0   : > { %v286_v50 = vmul.f32 1.2, %v284_v49 }
  0xf1   : > { %v617_v51 = vpop.eup %616 }
  0xf2   : > { %v289_v52 = vmul.f32 1.442695, %v286_v50  ;;  %v282_v53 = vmul.f32 0.6931472, %v617_v51  ;;  %v619_v54 = vpop.eup %618 }
  0xf3   : > { %v314_v57 = vadd.f32 0.0001, %v619_v54  ;;  %v621_v58 = vpop.eup %620 }
  0xf4   : > { %622 = vpow2.f32 %v289_v52  ;;  %v285_v55 = vmul.f32 1.2, %v282_v53  ;;  %v313_v59 = vadd.f32 0.0001, %v621_v58 }
  0xf6   : > { %v287_v56 = vmul.f32 1.442695, %v285_v55 }
  0xf8   : > { %624 = vpow2.f32 %v287_v56 }
  0xf9   : > { %626 = vrcp.f32 %v314_v57 }
  0xfa   : > { %628 = vrcp.f32 %v313_v59 }
  0xfe   : > { %v623_v62 = vpop.eup %622 }
  0xff   : > { %v292_v63 = vadd.f32 0.0001, %v623_v62 }
 0x101   : > { %630 = vrcp.f32 %v292_v63 }
 0x102   : > { %v625_v2 = vpop.eup %624 }
 0x103   : > { %v291_v4 = vadd.f32 0.0001, %v625_v2  ;;  %v627_v5 = vpop.eup %626 }
 0x104   : > { %v318_v9 = vmul.f32 1.5, %v627_v5  ;;  %v629_v14 = vpop.eup %628 }
 0x105   : > { %632 = vrcp.f32 %v291_v4  ;;  %v317_v22 = vmul.f32 1.5, %v629_v14 }
 0x106   : > { %v322_v19 = vmul.f32 %v320_v10, %v318_v9 }
 0x107   : > { %v321_v32 = vmul.f32 %v319_v20, %v317_v22 }
 0x108   : > { %v348_v29 = vsel %vm333_vm2, %v322_v19, 0.0 }
 0x10b   : > { %v631_v18 = vpop.eup %630 }
 0x10c   : > { %v296_v21 = vmul.f32 1.5, %v631_v18 }
 0x10e   : > { %v300_v23 = vmul.f32 %v298_v15, %v296_v21 }
 0x10f   : > { %v633_v27 = vpop.eup %632 }
 0x110   : > { %v342_v30 = vsel %vm329_vm1, %v300_v23, 0.0  ;;  %v295_v31 = vmul.f32 1.5, %v633_v27 }
 0x111   : > { %v350_v16 = vadd.f32 %v348_v29, %v342_v30 }
 0x112   : > { %v299_v35 = vmul.f32 %v297_v26, %v295_v31 }
 0x113   : > { %v354_v37 = vsel %vm336_vm3, %v350_v16, 0.0 }
 0x114   : > { %v349_v36 = vadd.f32 %v321_v32, %v299_v35 }
 0x116   : > { %v353_v39 = vsel %vm336_vm3, %v349_v36, 0.0 }
 0x117   : > { %v378_v24 = vadd.f32 %v354_v37, %v353_v39 }
 0x119   : > { %v387_v40 = vadd.f32 %v386_v38, %v378_v24 }
 0x11b   : > { %388 = vst [vmem:[%s223_s26] sm:$0xff] %v387_v40 }
 0x11c   : > { %707 = shalt.err (!%p704_p11)
}
 0x11d   : > { %s708_s5 = scalar_lea.hbm %s1013_s7, 128  ;;  %s712_s25 = scalar_lea.hbm %s1064_s2, 256 }
 0x11e   : > { %p709_p1 = scmp.ne.s32.totalorder %s1013_s7, %s708_s5  ;;  %p713_p4 = scmp.lt.u32.totalorder %s1013_s7, %s1064_s2 }
 0x11f   : > { %p714_p6 = scmp.lt.u32.totalorder %s712_s25, %s708_s5  ;;  %p716_p0 = scmp.lt.u32.totalorder %s708_s5, %s1013_s7 }
 0x120   : > { %p710_p5 = pnand %p709_p1, %p1075_p3 }
 0x121   : > { %p715_p8 = por %p714_p6, %p713_p4 }
 0x122   : > { %p711_p2 = pneg %p710_p5 }
 0x123   : > { %p717_p12 = por %p716_p0, %p715_p8 }
 0x125   : > { %p718_p13 = pnand %p717_p12, %p711_p2 }
 0x127   : > { %721 = shalt.err (!%p718_p13)
}
 0x128   : > { %539 = dma.vmem_to_hbm [thread:$0]  (%p1075_p3), %s1015_s3, 128, %s1013_s7, %s390_s18  }
 0x129 PF: > { %s416_s15 = sand.u32 1, %s760_s9   ;;  %p1076_p7 = scmp.ne.s32.totalorder %s1070_s24, 0 }
 0x12a   : > { %p1077_p10 = scmp.ge.s32.totalorder %s780_s14, 2  ;;  %s417_s21 = scalar_lea.sflag [#allocation6], %s416_s15 }
 0x12c   : > { %p549_p9 = pnand %p1077_p10, %p1076_p7 }
 0x12e   : > { %755 = dma.done.wait (!%p549_p9), %s417_s21, 128  }
 0x12f   : > { %757 = vsyncadd (!%p549_p9), %s417_s21, 4294967168  ;;  %s21_s14 = sadd.s32 1, %s780_s14   ;;  %s1078_s9 = smov %s764_s10 }
 0x130   : > { %p18_p11 = scmp.ge.s32.totalorder %s21_s14, 4   ;;  %s1079_s10 = smov %s768_s11 }
 0x131   : > { %s1080_s11 = smov %s860_s23  ;;  %s1081_s12 = smov %s776_s13 }
 0x132   : > { %s1082_s13 = smov %s1084_s17  ;;  %20 = sbr.rel (!%p18_p11) target bundleno = 8 (0x8), region = 88 }
 0x139   :  { %422 = vsyncpa [#allocation5], 1 }
 0x13a   :  { %424 = vsyncpa [#allocation5 + $0x1], 1 }
 0x13b   :  { %425 = vsyncpa [#allocation8], 1 }
 0x13c   :  { %427 = vsyncpa [#allocation8 + $0x1], 1 }
 0x13d   :  { %428 = vsyncpa [#allocation6], 1 }
 0x13e   :  { %430 = vsyncpa [#allocation6 + $0x1], 1 }

</bundles_post_ra>
